<compile_context>
chip_gen: v6e
topology: v6e:2x2x1
jax: 0.10.0
libtpu: 0.0.40
codegen_flags: <defaults>
</compile_context>

<pallas_src>
import jax
import jax.numpy as jnp
from jax import lax
from jax.experimental import pallas as pl
from jax.experimental.pallas import tpu as pltpu


def _round_up(x, m):
    return (x + m - 1) // m * m


def residual_kernel(x_ref, wt_ref, bgb_ref, o_ref):
    """One output-feature tile: BN(relu(x @ W^T + b)) * gamma + beta + x."""
    tile_d = o_ref.shape[1]
    x = x_ref[...]                                        # (N, Dp) f32, grid-resident
    # Linear: W was padded/transposed/cast (bf16) once at parameter-prep time, so this
    # is a plain MXU matmul — no transpose anywhere, f32 accumulation.
    h = jnp.dot(x.astype(wt_ref.dtype), wt_ref[...],
                preferred_element_type=jnp.float32)       # (N, TILE_D)
    bgb = bgb_ref[...]                                    # (3, TILE_D): bias/gamma/beta
    h = h + bgb[0:1, :]                                   # bias
    h = jnp.maximum(h, 0.0)                               # ReLU (VPU)
    # BatchNorm1d (training mode): per-feature mean / biased variance over the batch.
    # Whole batch is resident, so the reduction is local to this feature tile.
    inv_n = 1.0 / x.shape[0]
    mean = jnp.sum(h, axis=0, keepdims=True) * inv_n      # (1, TILE_D)
    diff = h - mean
    var = jnp.sum(diff * diff, axis=0, keepdims=True) * inv_n
    hn = diff * lax.rsqrt(var + 1e-5)                     # rsqrt -> EUP slot
    # Residual: slice the already-resident full-x block (no second x input / HBM read).
    off = pl.multiple_of(pl.program_id(0) * tile_d, 128)
    x_res = x_ref[:, pl.ds(off, tile_d)]
    o_ref[...] = (hn * bgb[1:2, :] + bgb[2:3, :] + x_res).astype(o_ref.dtype)


def prepare_params(w, b, gamma, beta, *, weight_dtype=jnp.bfloat16):
    """One-time parameter preparation (amortized across calls).

    w: (D, D) PyTorch Linear weight (out_features, in_features); b/gamma/beta: (D,).
    Produces a padded, pre-transposed, bf16 weight (in, out) and a fused (3, Dp)
    bias/gamma/beta array.
    """
    d = w.shape[0]
    dp = _round_up(d, 128)
    pad = dp - d
    wt = jnp.pad(w, ((0, pad), (0, pad))).T.astype(weight_dtype)      # (Dp_in, Dp_out)
    bgb = jnp.stack(
        [jnp.pad(b, (0, pad)), jnp.pad(gamma, (0, pad)), jnp.pad(beta, (0, pad))],
        axis=0,
    ).astype(jnp.float32)                                             # (3, Dp)
    return {"wt": wt, "bgb": bgb, "dim": d, "dp": dp}


def _vmem_cap_bytes():
    # ~15% headroom for compiler scoped scratch: ~108 MiB on v5e/v6e (128 MiB physical),
    # ~54 MiB on v7x (64 MiB physical). Conservative fallback if the query is unavailable.
    try:
        phys = pltpu.get_tpu_info().vmem_capacity_bytes
    except Exception:
        phys = 64 << 20
    return int(phys * 0.85)


def _per_step_bytes(n, dp, tile_d, w_itemsize):
    return (4 * n * dp               # resident x (f32)
            + w_itemsize * dp * tile_d   # W^T tile (bf16 stream)
            + 4 * 3 * tile_d         # fused bias/gamma/beta tile
            + 4 * n * tile_d)        # output tile


def residual_forward(x, params):
    """x: (N, D) f32; params from prepare_params."""
    n, d = x.shape
    dp = params["dp"]
    assert d == params["dim"]

    x_p = jnp.pad(x, ((0, 0), (0, dp - d))) if dp != d else x

    cap = _vmem_cap_bytes()
    w_itemsize = jnp.dtype(params["wt"].dtype).itemsize
    cands = [t for t in (2048, 1024, 512, 256, 128) if dp % t == 0]

    def fits(t):
        return 2 * _per_step_bytes(n, dp, t, w_itemsize) + (4 << 20) <= cap

    # Prefer the largest tile that fits AND yields >= 2 grid steps (megacore on v7x);
    # otherwise the largest that fits; otherwise the minimum lane-dense tile.
    tile_d = next((t for t in cands if dp // t >= 2 and fits(t)), None)
    if tile_d is None:
        tile_d = next((t for t in cands if fits(t)), 128)
    grid = (dp // tile_d,)

    vmem_limit = min(max(2 * _per_step_bytes(n, dp, tile_d, w_itemsize) + (4 << 20),
                         16 << 20), cap)

    # NOTE: if profiling shows exposed DMA on the W stream (tiny N => compute << DMA),
    # pipeline_mode=pl.Buffered(3) on the W BlockSpec is the next lever.
    out_p = pl.pallas_call(
        residual_kernel,
        out_shape=jax.ShapeDtypeStruct((n, dp), x.dtype),
        grid_spec=pltpu.PrefetchScalarGridSpec(
            num_scalar_prefetch=0,
            grid=grid,
            in_specs=[
                pl.BlockSpec((n, dp), lambda j: (0, 0)),        # x: full, resident
                pl.BlockSpec((dp, tile_d), lambda j: (0, j)),   # W^T tile (bf16)
                pl.BlockSpec((3, tile_d), lambda j: (0, j)),    # fused b/gamma/beta
            ],
            out_specs=pl.BlockSpec((n, tile_d), lambda j: (0, j)),
        ),
        compiler_params=pltpu.CompilerParams(
            dimension_semantics=("parallel",),
            vmem_limit_bytes=vmem_limit,
        ),
    )(x_p, params["wt"], params["bgb"])

    return out_p[:, :d] if dp != d else out_p


def residual_ref(x, w, b, gamma, beta, dot_dtype=jnp.float32):
    h = jnp.dot(x.astype(dot_dtype), w.T.astype(dot_dtype),
                preferred_element_type=jnp.float32) + b
    h = jnp.maximum(h, 0.0)
    mean = jnp.mean(h, axis=0, keepdims=True)
    var = jnp.mean((h - mean) ** 2, axis=0, keepdims=True)
    hn = (h - mean) / jnp.sqrt(var + 1e-5)
    return hn * gamma + beta + x


if __name__ == "__main__":
    batch, dim = 8, 32
    key = jax.random.PRNGKey(0)
    kx, kw, kb = jax.random.split(key, 3)

    x = jax.random.normal(kx, (batch, dim), dtype=jnp.float32)
    # Deterministic parameter init (Linear weight/bias ~ uniform, BN affine = defaults).
    bound = 1.0 / (dim ** 0.5)
    w = jax.random.uniform(kw, (dim, dim), jnp.float32, -bound, bound)
    b = jax.random.uniform(kb, (dim,), jnp.float32, -bound, bound)
    gamma = jnp.ones((dim,), jnp.float32)
    beta = jnp.zeros((dim,), jnp.float32)

    params = prepare_params(w, b, gamma, beta)          # one-time prep (bf16 W stream)
    out = residual_forward(x, params)
    out = jax.block_until_ready(out)
    assert out.shape == (batch, dim)

    # Tight check against a reference using the same bf16-rounded matmul operands
    # (isolates kernel math from the deliberate bf16 weight-stream quantization).
    ref_matched = residual_ref(x, w, b, gamma, beta, dot_dtype=jnp.bfloat16)
    assert jnp.allclose(out, ref_matched, atol=1e-4, rtol=1e-4)

    # Sanity check against the pure-f32 PyTorch-equivalent forward (loose tolerance
    # only because the weight is intentionally streamed in bf16).
    ref_f32 = residual_ref(x, w, b, gamma, beta)
    assert jnp.allclose(out, ref_f32, atol=1e-1, rtol=1e-1)

    print("KERNEL_OK")
</pallas_src>

<mosaic_0001>
module attributes {stable_mosaic.version = 11 : i64} {
  func.func @residual_kernel(%arg0: i32, %arg1: memref<8x128xf32, #tpu.memory_space<vmem>>, %arg2: memref<128x128xbf16, #tpu.memory_space<vmem>>, %arg3: memref<3x128xf32, #tpu.memory_space<vmem>>, %arg4: memref<8x128xf32, #tpu.memory_space<vmem>>) attributes {dimension_semantics = [#tpu.dimension_semantics<parallel>], iteration_bounds = array<i64: 1>, scalar_prefetch = 0 : i64, scratch_operands = 0 : i64, tpu.core_type = #tpu.core_type<tc>, window_params = [{pipeline_mode = #tpu.pipeline_mode<synchronous>, transform_indices = @transform_0, window_bounds = array<i64: 8, 128>}, {transform_indices = @transform_1, window_bounds = array<i64: 128, 128>}, {transform_indices = @transform_2, window_bounds = array<i64: 3, 128>}, {transform_indices = @transform_3, window_bounds = array<i64: 8, 128>}]} {
    %c0 = arith.constant 0 : index
    %c0_0 = arith.constant 0 : index
    %0 = vector.load %arg1[%c0, %c0_0] : memref<8x128xf32, #tpu.memory_space<vmem>>, vector<8x128xf32>
    %1 = arith.truncf %0 : vector<8x128xf32> to vector<8x128xbf16>
    %c0_1 = arith.constant 0 : index
    %c0_2 = arith.constant 0 : index
    %2 = vector.load %arg2[%c0_1, %c0_2] : memref<128x128xbf16, #tpu.memory_space<vmem>>, vector<128x128xbf16>
    %cst = arith.constant dense<0.000000e+00> : vector<8x128xf32>
    %3 = tpu.matmul %1, %2, %cst {dimension_numbers = #tpu.dot_dimension_numbers<[1], [0], [0], [1], [0, 0, 1, 1], [], []>} : vector<8x128xbf16>, vector<128x128xbf16>, vector<8x128xf32> -> vector<8x128xf32>
    %c0_3 = arith.constant 0 : index
    %c0_4 = arith.constant 0 : index
    %4 = vector.load %arg3[%c0_3, %c0_4] : memref<3x128xf32, #tpu.memory_space<vmem>>, vector<3x128xf32>
    %5 = vector.extract_strided_slice %4 {offsets = [0, 0], sizes = [1, 128], strides = [1, 1]} : vector<3x128xf32> to vector<1x128xf32>
    %6 = vector.broadcast %5 : vector<1x128xf32> to vector<8x128xf32>
    %7 = arith.addf %3, %6 : vector<8x128xf32>
    %cst_5 = arith.constant 0.000000e+00 : f32
    %8 = vector.broadcast %cst_5 : f32 to vector<8x128xf32>
    %9 = arith.maximumf %7, %8 : vector<8x128xf32>
    %cst_6 = arith.constant dense<0.000000e+00> : vector<128xf32>
    %10 = vector.multi_reduction <add>, %9, %cst_6 [0] : vector<8x128xf32> to vector<128xf32>
    %11 = vector.shape_cast %10 : vector<128xf32> to vector<1x128xf32>
    %cst_7 = arith.constant 1.250000e-01 : f32
    %12 = vector.broadcast %cst_7 : f32 to vector<1x128xf32>
    %13 = arith.mulf %11, %12 : vector<1x128xf32>
    %14 = vector.broadcast %13 : vector<1x128xf32> to vector<8x128xf32>
    %15 = arith.subf %9, %14 : vector<8x128xf32>
    %16 = arith.mulf %15, %15 : vector<8x128xf32>
    %cst_8 = arith.constant dense<0.000000e+00> : vector<128xf32>
    %17 = vector.multi_reduction <add>, %16, %cst_8 [0] : vector<8x128xf32> to vector<128xf32>
    %18 = vector.shape_cast %17 : vector<128xf32> to vector<1x128xf32>
    %cst_9 = arith.constant 1.250000e-01 : f32
    %19 = vector.broadcast %cst_9 : f32 to vector<1x128xf32>
    %20 = arith.mulf %18, %19 : vector<1x128xf32>
    %cst_10 = arith.constant 9.99999974E-6 : f32
    %21 = vector.broadcast %cst_10 : f32 to vector<1x128xf32>
    %22 = arith.addf %20, %21 : vector<1x128xf32>
    %23 = math.rsqrt %22 : vector<1x128xf32>
    %24 = vector.broadcast %23 : vector<1x128xf32> to vector<8x128xf32>
    %25 = arith.mulf %15, %24 : vector<8x128xf32>
    %c128_i32 = arith.constant 128 : i32
    %26 = arith.muli %arg0, %c128_i32 : i32
    %27 = tpu.assume_multiple %26, 128 : i32
    %c0_11 = arith.constant 0 : index
    %28 = arith.index_cast %27 : i32 to index
    %29 = vector.load %arg1[%c0_11, %28] : memref<8x128xf32, #tpu.memory_space<vmem>>, vector<8x128xf32>
    %30 = vector.extract_strided_slice %4 {offsets = [1, 0], sizes = [1, 128], strides = [1, 1]} : vector<3x128xf32> to vector<1x128xf32>
    %31 = vector.broadcast %30 : vector<1x128xf32> to vector<8x128xf32>
    %32 = arith.mulf %25, %31 : vector<8x128xf32>
    %33 = vector.extract_strided_slice %4 {offsets = [2, 0], sizes = [1, 128], strides = [1, 1]} : vector<3x128xf32> to vector<1x128xf32>
    %34 = vector.broadcast %33 : vector<1x128xf32> to vector<8x128xf32>
    %35 = arith.addf %32, %34 : vector<8x128xf32>
    %36 = arith.addf %35, %29 : vector<8x128xf32>
    %c0_12 = arith.constant 0 : index
    %c0_13 = arith.constant 0 : index
    %37 = vector.load %arg4[%c0_12, %c0_13] : memref<8x128xf32, #tpu.memory_space<vmem>>, vector<8x128xf32>
    tpu.vector_store %arg4[%c0_12, %c0_13], %36 {strides = array<i32>} : memref<8x128xf32, #tpu.memory_space<vmem>>, vector<8x128xf32>,
    return
  }
  func.func @transform_0(%arg0: i32) -> (i32, i32) {
    %c0_i32 = arith.constant 0 : i32
    %c0_i32_0 = arith.constant 0 : i32
    %c0_i32_1 = arith.constant 0 : i32
    return %c0_i32, %c0_i32_0 : i32, i32
  }
  func.func @transform_1(%arg0: i32) -> (i32, i32) {
    %c0_i32 = arith.constant 0 : i32
    %c0_i32_0 = arith.constant 0 : i32
    return %c0_i32, %arg0 : i32, i32
  }
  func.func @transform_2(%arg0: i32) -> (i32, i32) {
    %c0_i32 = arith.constant 0 : i32
    %c0_i32_0 = arith.constant 0 : i32
    return %c0_i32, %arg0 : i32, i32
  }
  func.func @transform_3(%arg0: i32) -> (i32, i32) {
    %c0_i32 = arith.constant 0 : i32
    %c0_i32_0 = arith.constant 0 : i32
    return %c0_i32, %arg0 : i32, i32
  }
}

</mosaic_0001>

<bundles_post_ra>
// kernel: tpu_custom_call.1
= control target key start
LH: loop header
LB: loop body
LE: loop exit
PB: predicated region body
PF: predicated region fallthrough
CT: control target
= control target key end

     0   :  { %8 = vsyncpa [#allocation3], 0  ;;  %s399_s0 = inlined_call_operand.hbm [shape: f32[8,128], index: 0, kind: input, shape index: {}]   ;;  %s400_s1 = inlined_call_operand.hbm [shape: bf16[128,128], index: 1, kind: input, shape index: {}]   ;;  %s401_s2 = inlined_call_operand.hbm [shape: f32[3,128], index: 2, kind: input, shape index: {}]   ;;  %s402_s3 = inlined_call_operand.hbm [shape: f32[8,128], index: 3, kind: output, shape index: {}]  }
   0x1   :  { %9 = vsyncpa [#allocation6], 0 }
   0x2   :  { %10 = vsyncpa [#allocation4], 0  ;;  %s359_s12 = smov [#allocation5]  }
   0x3   :  { %s26_s13 = sshll.u32 %s359_s12, 4  ;;  %s27_s13 = int_to_ptr.vmem [resolvable:$true] %s26_s13 }
   0x4   :  { %s281_s14 = scalar_lea.vmem %s27_s13, 1024  ;;  %p286_p1 = scmp.lt.s32.totalorder %s27_s13, %s27_s13 }
   0x5   :  { %p282_p0 = scmp.ne.s32.totalorder %s27_s13, %s281_s14  ;;  %p287_p2 = scmp.lt.s32.totalorder %s281_s14, %s281_s14 }
   0x7   :  { %p288_p3 = por %p287_p2, %p286_p1 }
   0x9   :  { %p289_p4 = pnand %p288_p3, %p282_p0 }
   0xb   :  { %292 = shalt.err (!%p289_p4)
}
   0xc   :  { %s360_s15 = smov 64   ;;  %s361_s16 = smov 4  }
   0xd   :  { %32 = dma.hbm_to_vmem [thread:$0]  %s400_s1, 1024, %s27_s13, [#allocation6], %s360_s15, %s360_s15, %s361_s16  }
   0xe   :  { %s362_s19 = smov [#allocation2]   ;;  %s363_s21 = smov [#allocation7]  }
   0xf   :  { %s17_s20 = sshll.u32 %s362_s19, 4  ;;  %s39_s22 = sshll.u32 %s363_s21, 4  ;;  %s18_s20 = int_to_ptr.vmem [resolvable:$true] %s17_s20  ;;  %s40_s22 = int_to_ptr.vmem [resolvable:$true] %s39_s22 }
  0x10   :  { %s301_s23 = scalar_lea.vmem %s18_s20, 128  ;;  %p306_p6 = scmp.lt.s32.totalorder %s18_s20, %s18_s20 }
  0x11   :  { %p302_p5 = scmp.ne.s32.totalorder %s18_s20, %s301_s23  ;;  %p307_p7 = scmp.lt.s32.totalorder %s301_s23, %s301_s23 }
  0x13   :  { %p308_p8 = por %p307_p7, %p306_p6 }
  0x15   :  { %p309_p9 = pnand %p308_p8, %p302_p5 }
  0x17   :  { %312 = shalt.err (!%p309_p9)
}
  0x18   :  { %20 = dma.hbm_to_vmem [thread:$0]  %s399_s0, 128, %s18_s20, [#allocation3]  }
  0x19   :  { %s321_s26 = scalar_lea.vmem %s40_s22, 64  ;;  %p326_p11 = scmp.lt.s32.totalorder %s40_s22, %s40_s22 }
  0x1a   :  { %p322_p10 = scmp.ne.s32.totalorder %s40_s22, %s321_s26  ;;  %p327_p12 = scmp.lt.s32.totalorder %s321_s26, %s321_s26 }
  0x1c   :  { %p328_p13 = por %p327_p12, %p326_p11 }
  0x1e   :  { %p329_p0 = pnand %p328_p13, %p322_p10 }
  0x20   :  { %332 = shalt.err (!%p329_p0)
}
  0x21   :  { %42 = dma.hbm_to_vmem [thread:$0]  %s401_s2, 64, %s40_s22, [#allocation6]  }
  0x22   :  { %353 = dma.done.wait [#allocation3], 128  }
  0x23   :  { %354 = vsyncadd [#allocation3], 4294967168 }
  0x24   :  { %355 = dma.done.wait [#allocation6], 1088  }
  0x25   :  { %356 = vsyncadd [#allocation6], 4294966208  ;;  %v364_v0 = vmov 0.0   ;;  %vm365_vm0 = vmmov 0   ;;  %v263_v1 = vld [vmem:[#allocation5 + $0x38] sm:$0xff]   ;;  %v264_v2 = vld [vmem:[#allocation5 + $0x30] sm:$0xff]   ;;  %v72_v11 = vlaneseq }
  0x26   :  { %235 = vmatprep.subr.bf16.mxu0 %v364_v0  ;;  %251 = vmatprep.mubr.msk.bf16.mxu0 %vm365_vm0, %v364_v0  ;;  %v265_v3 = vld [vmem:[#allocation5 + $0x28] sm:$0xff]   ;;  %v266_v4 = vld [vmem:[#allocation5 + $0x20] sm:$0xff]   ;;  %v267_v5 = vld [vmem:[#allocation5 + $0x18] sm:$0xff]   ;;  %s366_s0 = smov [#allocation8]  }
  0x27   :  { %236 = vmatpush3.bf16.msra.mxu0 %v263_v1  ;;  %v268_v6 = vld [vmem:[#allocation5 + $0x10] sm:$0xff]   ;;  %v269_v7 = vld [vmem:[#allocation5 + $0x8] sm:$0xff]   ;;  %v270_v8 = vld [vmem:[#allocation5] sm:$0xff]   ;;  %v73_v12 = vshrl.u32 %v72_v11, 7  ;;  %s207_s2 = sshll.u32 %s366_s0, 4  ;;  %s208_s2 = int_to_ptr.vmem [resolvable:$true] %s207_s2 }
  0x28   :  { %237 = vmatprep.subr.bf16.mxu0 %v364_v0  ;;  %v53_v9 = vld [vmem:[#allocation2] sm:$0xff]  ;;  %v71_v14 = vld [vmem:[#allocation7] sm:$0x7]  ;;  %s333_s28 = scalar_lea.vmem %s208_s2, 128  ;;  %p338_p2 = scmp.lt.s32.totalorder %s208_s2, %s208_s2 }
  0x29   :  { %v54_v10 = vpack.c.bf16 %v53_v9, %v53_v9  ;;  %v74_v13 = vsub.s32 0, %v73_v12  ;;  %v191_v39 = vsub.s32 1, %v73_v12  ;;  %v196_v40 = vsub.s32 2, %v73_v12  ;;  %p334_p1 = scmp.ne.s32.totalorder %s208_s2, %s333_s28  ;;  %p339_p3 = scmp.lt.s32.totalorder %s333_s28, %s333_s28 }
  0x2b   :  { %238 = vmatpush3.bf16.msra.mxu0 %v264_v2  ;;  %v75_v15 = vrot.slane %v71_v14, %v74_v13  ;;  %v192_v41 = vrot.slane %v71_v14, %v191_v39  ;;  %v197_v44 = vrot.slane %v71_v14, %v196_v40  ;;  %p340_p4 = por %p339_p3, %p338_p2 }
  0x2c   :  { %239 = vmatprep.subr.bf16.mxu0 %v364_v0 }
  0x2d   :  { %p341_p5 = pnand %p340_p4, %p334_p1 }
  0x2f   :  { %240 = vmatpush3.bf16.msra.mxu0 %v265_v3 }
  0x30   :  { %241 = vmatprep.subr.bf16.mxu0 %v364_v0 }
  0x33   :  { %242 = vmatpush3.bf16.msra.mxu0 %v266_v4 }
  0x34   :  { %243 = vmatprep.subr.bf16.mxu0 %v364_v0 }
  0x37   :  { %244 = vmatpush3.bf16.msra.mxu0 %v267_v5 }
  0x38   :  { %245 = vmatprep.subr.bf16.mxu0 %v364_v0 }
  0x3b   :  { %246 = vmatpush3.bf16.msra.mxu0 %v268_v6 }
  0x3c   :  { %247 = vmatprep.subr.bf16.mxu0 %v364_v0 }
  0x3f   :  { %248 = vmatpush3.bf16.msra.mxu0 %v269_v7 }
  0x40   :  { %249 = vmatprep.subr.bf16.mxu0 %v364_v0 }
  0x43   :  { %250 = vmatpush3.bf16.msra.mxu0 %v270_v8 }
  0x46   :  { %252 = vmatmul.mubr.bf16.vlgmr.msra.gmra.mxu0 %v54_v10 }
 0x106   :  { %v158_v16 = vpop.f32.mrf.mxu0 }
 0x107   :  { %v159_v17 = vadd.f32 %v158_v16, %v75_v15 }
 0x108   :  { %v253_v18 = vpop.f32.mrf.mxu0 }
 0x109   :  { %v164_v19 = vmax.f32 %v159_v17, 0.0 }
 0x10a   :  { %v161_v20 = vpop.f32.mrf.mxu0 }
 0x10b   :  { %v165_v21 = vrot.slane %v164_v19, 4 }
 0x10c   :  { %v254_v22 = vpop.f32.mrf.mxu0 }
 0x10d   :  { %v166_v23 = vadd.f32 %v165_v21, %v164_v19 }
 0x10f   :  { %v167_v24 = vrot.slane %v166_v23, 2 }
 0x111   :  { %v168_v25 = vadd.f32 %v167_v24, %v166_v23 }
 0x113   :  { %v169_v26 = vrot.slane %v168_v25, 1 }
 0x115   :  { %v170_v27 = vadd.f32 %v169_v26, %v168_v25 }
 0x117   :  { %v171_v28 = vmul.f32 0.125, %v170_v27 }
 0x119   :  { %v172_v29 = vsub.f32 %v164_v19, %v171_v28 }
 0x11b   :  { %v173_v30 = vmul.f32 %v172_v29, %v172_v29 }
 0x11d   :  { %v174_v31 = vrot.slane %v173_v30, 4 }
 0x11f   :  { %v175_v32 = vadd.f32 %v174_v31, %v173_v30 }
 0x121   :  { %v176_v33 = vrot.slane %v175_v32, 2 }
 0x123   :  { %v177_v34 = vadd.f32 %v176_v33, %v175_v32 }
 0x125   :  { %v178_v35 = vrot.slane %v177_v34, 1 }
 0x127   :  { %v179_v36 = vadd.f32 %v178_v35, %v177_v34 }
 0x129   :  { %v180_v37 = vmul.f32 0.125, %v179_v36 }
 0x12b   :  { %v181_v38 = vadd.f32 1e-05, %v180_v37 }
 0x12d   :  { %271 = vrsqrt.f32 %v181_v38 }
 0x13a   :  { %v272_v42 = vpop.eup %271 }
 0x13b   :  { %v183_v43 = vmul.f32 %v272_v42, %v172_v29 }
 0x13d   :  { %v193_v45 = vmul.f32 %v192_v41, %v183_v43 }
 0x13f   :  { %v198_v46 = vadd.f32 %v197_v44, %v193_v45 }
 0x141   :  { %v199_v47 = vadd.f32 %v198_v46, %v53_v9 }
 0x143   :  { %200 = vst [vmem:[#allocation8] sm:$0xff] %v199_v47 }
 0x144   :  { %344 = shalt.err (!%p341_p5)
}
 0x145   :  { %210 = dma.vmem_to_hbm [thread:$0]  %s208_s2, 128, %s402_s3, [#allocation4]  }
 0x146   :  { %357 = dma.done.wait [#allocation4], 128  }
 0x147   :  { %358 = vsyncadd [#allocation4], 4294967168 }
 0x148   :  { %214 = vsyncpa [#allocation3], 1 }
 0x149   :  { %215 = vsyncpa [#allocation6], 1 }
 0x14a   :  { %216 = vsyncpa [#allocation4], 1 }

</bundles_post_ra>
